<compile_context>
chip_gen: v7x
topology: tpu7x:2x2x1
jax: 0.10.0
libtpu: 0.0.40
codegen_flags: <defaults>
</compile_context>

<pallas_src>
import jax
import jax.numpy as jnp
from jax.experimental import pallas as pl
from jax.experimental.pallas import tpu as pltpu


def decoder_kernel(x_ref, w1_ref, b1_ref, w2_ref, b2_ref, w3_ref, b3_ref, o_ref):
    # ---- Layer 1: (TB, z_dim) @ (z_dim, 16) + b1 -> ReLU -------------------
    # z_dim (=2) and N (=16) are far too small for an MXU push; compute on
    # the VPU with statically-unrolled broadcast multiply-adds.
    x = x_ref[...]                       # (TB, z_dim) f32
    w1 = w1_ref[...]                     # (z_dim, H2) f32
    h1 = b1_ref[...]                     # (1, H2) -> broadcasts to (TB, H2)
    for k in range(x_ref.shape[1]):
        h1 = h1 + x[:, k:k + 1] * w1[k:k + 1, :]
    h1 = jnp.maximum(h1, 0.0)            # (TB, H2) f32

    # ---- Layer 2: (TB, 16) @ (16, 128) + b2 -> ReLU ------------------------
    # bf16 MXU matmul, f32 accumulation; bias/ReLU in f32.
    h2 = jnp.dot(h1.astype(w2_ref.dtype), w2_ref[...],
                 preferred_element_type=jnp.float32)
    h2 = jnp.maximum(h2 + b2_ref[...], 0.0)          # (TB, H1) f32

    # ---- Layer 3: (TB, 128) @ (128, 784) + b3 -> sigmoid -------------------
    z = jnp.dot(h2.astype(w3_ref.dtype), w3_ref[...],
                preferred_element_type=jnp.float32)
    z = z + b3_ref[...]                               # (TB, 784) f32
    # Sigmoid: exp on the EUP (f32, safe on v5e), approx reciprocal stays on
    # the EUP slot instead of a VALU Newton-refined divide.
    o_ref[...] = pl.reciprocal(1.0 + jnp.exp(-z), approx=True).astype(o_ref.dtype)


def decoder_forward(x, kparams, *, tb=512):
    """x: (B, z_dim) float32. kparams: kernel-layout params (see pack_kernel_params)."""
    w1, b1 = kparams["w1"], kparams["b1"]   # (z_dim, H2) f32, (1, H2) f32
    w2, b2 = kparams["w2"], kparams["b2"]   # (H2, H1)  bf16,  (1, H1) f32
    w3, b3 = kparams["w3"], kparams["b3"]   # (H1, out) bf16,  (1, out) f32
    out_dim = w3.shape[1]
    h2_dim, h1_dim = w1.shape[1], w2.shape[1]

    B, z_dim = x.shape
    # Batch tile: multiple of 8, capped at 1024 (keeps the double-buffered f32
    # output tile + f32 temporaries comfortably inside v7x's 64 MiB VMEM),
    # and no larger than the (rounded-up) batch.
    tb = max(8, min(tb, 1024))
    tb = min(tb, ((B + 7) // 8) * 8)
    grid_b = pl.cdiv(B, tb)
    bp = grid_b * tb
    xp = jnp.pad(x, ((0, bp - B), (0, 0))) if bp != B else x

    const2 = lambda i: (0, 0)                  # weights/biases resident in VMEM

    cost = pl.CostEstimate(
        flops=2 * bp * (z_dim * h2_dim + h2_dim * h1_dim + h1_dim * out_dim),
        transcendentals=bp * out_dim,
        bytes_accessed=4 * bp * (z_dim + out_dim)
        + 2 * (w2.size + w3.size)
        + 4 * (w1.size + b1.size + b2.size + b3.size),
    )

    out = pl.pallas_call(
        decoder_kernel,
        out_shape=jax.ShapeDtypeStruct((bp, out_dim), jnp.float32),
        grid=(grid_b,),
        in_specs=[
            pl.BlockSpec((tb, z_dim), lambda i: (i, 0)),     # x: batch-tiled
            pl.BlockSpec(w1.shape, const2), pl.BlockSpec(b1.shape, const2),
            pl.BlockSpec(w2.shape, const2), pl.BlockSpec(b2.shape, const2),
            pl.BlockSpec(w3.shape, const2), pl.BlockSpec(b3.shape, const2),
        ],
        # Last dim (784) equals the full array dim, so the block is legal and
        # no padding / post-kernel slice pass is needed.
        out_specs=pl.BlockSpec((tb, out_dim), lambda i: (i, 0)),
        compiler_params=pltpu.CompilerParams(
            dimension_semantics=("parallel",),
        ),
        cost_estimate=cost,
    )(xp, w1, b1, w2, b2, w3, b3)

    return out if bp == B else out[:B]


def init_decoder_params(key, input=784, hize1=128, hize2=16, z_dim=2):
    """f32 params equivalent to the PyTorch module, pre-transposed to (in, out)."""
    ks = jax.random.split(key, 6)

    def linear(kw, kb, fan_in, fan_out):
        # mimic nn.Linear default init: U(-1/sqrt(fan_in), 1/sqrt(fan_in))
        bound = 1.0 / jnp.sqrt(fan_in)
        w = jax.random.uniform(kw, (fan_in, fan_out), jnp.float32, -bound, bound)
        b = jax.random.uniform(kb, (1, fan_out), jnp.float32, -bound, bound)
        return w, b

    w1, b1 = linear(ks[0], ks[1], z_dim, hize2)    # inhid:    z_dim -> hize2
    w2, b2 = linear(ks[2], ks[3], hize2, hize1)    # hid1hid2: hize2 -> hize1
    w3, b3 = linear(ks[4], ks[5], hize1, input)    # hidz:     hize1 -> input
    return {"w1": w1, "b1": b1, "w2": w2, "b2": b2, "w3": w3, "b3": b3}


def pack_kernel_params(params):
    """Kernel layout: bf16 MXU weights for the two non-trivial matmuls, no padding."""
    return {
        "w1": params["w1"], "b1": params["b1"],               # f32 (tiny VPU layer)
        "w2": params["w2"].astype(jnp.bfloat16), "b2": params["b2"],
        "w3": params["w3"].astype(jnp.bfloat16), "b3": params["b3"],
    }


def decoder_reference(x, params):
    """Pure-JAX f32 reference matching the PyTorch forward."""
    h = jnp.maximum(x @ params["w1"] + params["b1"], 0.0)
    h = jnp.maximum(h @ params["w2"] + params["b2"], 0.0)
    z = h @ params["w3"] + params["b3"]
    return 1.0 / (1.0 + jnp.exp(-z))


if __name__ == "__main__":
    key = jax.random.PRNGKey(0)
    k_param, k_x = jax.random.split(key)

    # Small, module-consistent shapes: module defaults (784, 128, 16, 2), batch 64.
    B, INPUT, H1, H2, Z = 64, 784, 128, 16, 2
    params = init_decoder_params(k_param, INPUT, H1, H2, Z)
    kparams = pack_kernel_params(params)
    x = jax.random.normal(k_x, (B, Z), jnp.float32)

    out = jax.block_until_ready(decoder_forward(x, kparams))
    ref = decoder_reference(x, params)

    assert out.shape == (B, INPUT), out.shape
    max_err = float(jnp.max(jnp.abs(out - ref)))
    assert jnp.allclose(out, ref, atol=2e-2, rtol=2e-2), f"mismatch vs reference: {max_err}"

    print("KERNEL_OK")
</pallas_src>

<mosaic_0001>
module attributes {stable_mosaic.version = 11 : i64} {
  func.func @decoder_kernel(%arg0: i32, %arg1: memref<64x2xf32, #tpu.memory_space<vmem>>, %arg2: memref<2x16xf32, #tpu.memory_space<vmem>>, %arg3: memref<1x16xf32, #tpu.memory_space<vmem>>, %arg4: memref<16x128xbf16, #tpu.memory_space<vmem>>, %arg5: memref<1x128xf32, #tpu.memory_space<vmem>>, %arg6: memref<128x784xbf16, #tpu.memory_space<vmem>>, %arg7: memref<1x784xf32, #tpu.memory_space<vmem>>, %arg8: memref<64x784xf32, #tpu.memory_space<vmem>>) attributes {dimension_semantics = [#tpu.dimension_semantics<parallel>], iteration_bounds = array<i64: 1>, scalar_prefetch = 0 : i64, scratch_operands = 0 : i64, tpu.core_type = #tpu.core_type<tc>, window_params = [{transform_indices = @transform_0, window_bounds = array<i64: 64, 2>}, {pipeline_mode = #tpu.pipeline_mode<synchronous>, transform_indices = @transform_1, window_bounds = array<i64: 2, 16>}, {pipeline_mode = #tpu.pipeline_mode<synchronous>, transform_indices = @transform_2, window_bounds = array<i64: 1, 16>}, {pipeline_mode = #tpu.pipeline_mode<synchronous>, transform_indices = @transform_3, window_bounds = array<i64: 16, 128>}, {pipeline_mode = #tpu.pipeline_mode<synchronous>, transform_indices = @transform_4, window_bounds = array<i64: 1, 128>}, {pipeline_mode = #tpu.pipeline_mode<synchronous>, transform_indices = @transform_5, window_bounds = array<i64: 128, 784>}, {pipeline_mode = #tpu.pipeline_mode<synchronous>, transform_indices = @transform_6, window_bounds = array<i64: 1, 784>}, {transform_indices = @transform_7, window_bounds = array<i64: 64, 784>}]} {
    %c0 = arith.constant 0 : index
    %c0_0 = arith.constant 0 : index
    %0 = vector.load %arg1[%c0, %c0_0] : memref<64x2xf32, #tpu.memory_space<vmem>>, vector<64x2xf32>
    %c0_1 = arith.constant 0 : index
    %c0_2 = arith.constant 0 : index
    %1 = vector.load %arg2[%c0_1, %c0_2] : memref<2x16xf32, #tpu.memory_space<vmem>>, vector<2x16xf32>
    %c0_3 = arith.constant 0 : index
    %c0_4 = arith.constant 0 : index
    %2 = vector.load %arg3[%c0_3, %c0_4] : memref<1x16xf32, #tpu.memory_space<vmem>>, vector<1x16xf32>
    %3 = vector.extract_strided_slice %0 {offsets = [0, 0], sizes = [64, 1], strides = [1, 1]} : vector<64x2xf32> to vector<64x1xf32>
    %4 = vector.extract_strided_slice %1 {offsets = [0, 0], sizes = [1, 16], strides = [1, 1]} : vector<2x16xf32> to vector<1x16xf32>
    %5 = vector.broadcast %3 : vector<64x1xf32> to vector<64x16xf32>
    %6 = vector.broadcast %4 : vector<1x16xf32> to vector<64x16xf32>
    %7 = arith.mulf %5, %6 : vector<64x16xf32>
    %8 = vector.broadcast %2 : vector<1x16xf32> to vector<64x16xf32>
    %9 = arith.addf %8, %7 : vector<64x16xf32>
    %10 = vector.extract_strided_slice %0 {offsets = [0, 1], sizes = [64, 1], strides = [1, 1]} : vector<64x2xf32> to vector<64x1xf32>
    %11 = vector.extract_strided_slice %1 {offsets = [1, 0], sizes = [1, 16], strides = [1, 1]} : vector<2x16xf32> to vector<1x16xf32>
    %12 = vector.broadcast %10 : vector<64x1xf32> to vector<64x16xf32>
    %13 = vector.broadcast %11 : vector<1x16xf32> to vector<64x16xf32>
    %14 = arith.mulf %12, %13 : vector<64x16xf32>
    %15 = arith.addf %9, %14 : vector<64x16xf32>
    %cst = arith.constant 0.000000e+00 : f32
    %16 = vector.broadcast %cst : f32 to vector<64x16xf32>
    %17 = arith.maximumf %15, %16 : vector<64x16xf32>
    %18 = arith.truncf %17 : vector<64x16xf32> to vector<64x16xbf16>
    %c0_5 = arith.constant 0 : index
    %c0_6 = arith.constant 0 : index
    %19 = vector.load %arg4[%c0_5, %c0_6] : memref<16x128xbf16, #tpu.memory_space<vmem>>, vector<16x128xbf16>
    %cst_7 = arith.constant dense<0.000000e+00> : vector<64x128xf32>
    %20 = tpu.matmul %18, %19, %cst_7 {dimension_numbers = #tpu.dot_dimension_numbers<[1], [0], [0], [1], [0, 0, 1, 1], [], []>} : vector<64x16xbf16>, vector<16x128xbf16>, vector<64x128xf32> -> vector<64x128xf32>
    %c0_8 = arith.constant 0 : index
    %c0_9 = arith.constant 0 : index
    %21 = vector.load %arg5[%c0_8, %c0_9] : memref<1x128xf32, #tpu.memory_space<vmem>>, vector<1x128xf32>
    %22 = vector.broadcast %21 : vector<1x128xf32> to vector<64x128xf32>
    %23 = arith.addf %20, %22 : vector<64x128xf32>
    %cst_10 = arith.constant 0.000000e+00 : f32
    %24 = vector.broadcast %cst_10 : f32 to vector<64x128xf32>
    %25 = arith.maximumf %23, %24 : vector<64x128xf32>
    %26 = arith.truncf %25 : vector<64x128xf32> to vector<64x128xbf16>
    %c0_11 = arith.constant 0 : index
    %c0_12 = arith.constant 0 : index
    %27 = vector.load %arg6[%c0_11, %c0_12] : memref<128x784xbf16, #tpu.memory_space<vmem>>, vector<128x784xbf16>
    %cst_13 = arith.constant dense<0.000000e+00> : vector<64x784xf32>
    %28 = tpu.matmul %26, %27, %cst_13 {dimension_numbers = #tpu.dot_dimension_numbers<[1], [0], [0], [1], [0, 0, 1, 1], [], []>} : vector<64x128xbf16>, vector<128x784xbf16>, vector<64x784xf32> -> vector<64x784xf32>
    %c0_14 = arith.constant 0 : index
    %c0_15 = arith.constant 0 : index
    %29 = vector.load %arg7[%c0_14, %c0_15] : memref<1x784xf32, #tpu.memory_space<vmem>>, vector<1x784xf32>
    %30 = vector.broadcast %29 : vector<1x784xf32> to vector<64x784xf32>
    %31 = arith.addf %28, %30 : vector<64x784xf32>
    %cst_16 = arith.constant 0.000000e+00 : f32
    %32 = vector.broadcast %cst_16 : f32 to vector<64x784xf32>
    %33 = arith.subf %32, %31 : vector<64x784xf32>
    %34 = math.exp %33 : vector<64x784xf32>
    %cst_17 = arith.constant 1.000000e+00 : f32
    %35 = vector.broadcast %cst_17 : f32 to vector<64x784xf32>
    %36 = arith.addf %35, %34 : vector<64x784xf32>
    %37 = tpu.reciprocal %36 {approx = true} : vector<64x784xf32> -> vector<64x784xf32>
    %c0_18 = arith.constant 0 : index
    %c0_19 = arith.constant 0 : index
    %38 = vector.load %arg8[%c0_18, %c0_19] : memref<64x784xf32, #tpu.memory_space<vmem>>, vector<64x784xf32>
    tpu.vector_store %arg8[%c0_18, %c0_19], %37 {strides = array<i32>} : memref<64x784xf32, #tpu.memory_space<vmem>>, vector<64x784xf32>,
    return
  }
  func.func @transform_0(%arg0: i32) -> (i32, i32) {
    %c0_i32 = arith.constant 0 : i32
    %c0_i32_0 = arith.constant 0 : i32
    return %arg0, %c0_i32 : i32, i32
  }
  func.func @transform_1(%arg0: i32) -> (i32, i32) {
    %c0_i32 = arith.constant 0 : i32
    %c0_i32_0 = arith.constant 0 : i32
    %c0_i32_1 = arith.constant 0 : i32
    return %c0_i32, %c0_i32_0 : i32, i32
  }
  func.func @transform_2(%arg0: i32) -> (i32, i32) {
    %c0_i32 = arith.constant 0 : i32
    %c0_i32_0 = arith.constant 0 : i32
    %c0_i32_1 = arith.constant 0 : i32
    return %c0_i32, %c0_i32_0 : i32, i32
  }
  func.func @transform_3(%arg0: i32) -> (i32, i32) {
    %c0_i32 = arith.constant 0 : i32
    %c0_i32_0 = arith.constant 0 : i32
    %c0_i32_1 = arith.constant 0 : i32
    return %c0_i32, %c0_i32_0 : i32, i32
  }
  func.func @transform_4(%arg0: i32) -> (i32, i32) {
    %c0_i32 = arith.constant 0 : i32
    %c0_i32_0 = arith.constant 0 : i32
    %c0_i32_1 = arith.constant 0 : i32
    return %c0_i32, %c0_i32_0 : i32, i32
  }
  func.func @transform_5(%arg0: i32) -> (i32, i32) {
    %c0_i32 = arith.constant 0 : i32
    %c0_i32_0 = arith.constant 0 : i32
    %c0_i32_1 = arith.constant 0 : i32
    return %c0_i32, %c0_i32_0 : i32, i32
  }
  func.func @transform_6(%arg0: i32) -> (i32, i32) {
    %c0_i32 = arith.constant 0 : i32
    %c0_i32_0 = arith.constant 0 : i32
    %c0_i32_1 = arith.constant 0 : i32
    return %c0_i32, %c0_i32_0 : i32, i32
  }
  func.func @transform_7(%arg0: i32) -> (i32, i32) {
    %c0_i32 = arith.constant 0 : i32
    %c0_i32_0 = arith.constant 0 : i32
    return %arg0, %c0_i32 : i32, i32
  }
}

</mosaic_0001>

<bundles_post_ra>
// kernel: tpu_custom_call.1
= control target key start
LH: loop header
LB: loop body
LE: loop exit
PB: predicated region body
PF: predicated region fallthrough
CT: control target
= control target key end

     0   :  { %v1754_v2 = vmov 0   ;;  %v1755_v5 = vmov 1   ;;  %s2254_s0 = inlined_call_operand.vmem [shape: f32[64,2], index: 0, kind: input, shape index: {}]   ;;  %s2255_s1 = inlined_call_operand.vmem [shape: f32[2,16], index: 1, kind: input, shape index: {}]   ;;  %s2256_s2 = inlined_call_operand.vmem [shape: f32[1,16], index: 2, kind: input, shape index: {}]   ;;  %s2257_s3 = inlined_call_operand.vmem [shape: bf16[16,128], index: 3, kind: input, shape index: {}]   ;;  %s2258_s4 = inlined_call_operand.vmem [shape: f32[1,128], index: 4, kind: input, shape index: {}]   ;;  %s2259_s5 = inlined_call_operand.vmem [shape: bf16[128,784], index: 5, kind: input, shape index: {}]   ;;  %s2260_s6 = inlined_call_operand.vmem [shape: f32[1,784], index: 6, kind: input, shape index: {}]   ;;  %s2261_s7 = inlined_call_operand.hbm [shape: f32[64,784], index: 7, kind: output, shape index: {}]  }
   0x1   :  { %v30_v0 = vld [vmem:[%s2254_s0 + $0x10] sm:$0xff]  ;;  %v28_v1 = vld [vmem:[%s2254_s0] sm:$0xff]  ;;  %1418 = vset.pattern.permute.xlu1 %v1754_v2  ;;  %1417 = vset.pattern.permute.xlu0 %v1754_v2  ;;  %v31_v3 = vld [vmem:[%s2254_s0 + $0x18] sm:$0xff] }
   0x2   :  { %50 = vperm.xlu1 %1418, %v30_v0   ;;  %40 = vperm.xlu0 %1417, %v28_v1   ;;  %v29_v4 = vld [vmem:[%s2254_s0 + $0x8] sm:$0xff]  ;;  %v32_v6 = vld [vmem:[%s2254_s0 + $0x20] sm:$0xff]  ;;  %v34_v9 = vld [vmem:[%s2254_s0 + $0x30] sm:$0xff] }
   0x3   :  { %694 = vmatprep.mubr.bf16.mxu1 %v1754_v2  ;;  %v33_v7 = vld [vmem:[%s2254_s0 + $0x28] sm:$0xff]  ;;  %v1425_v8 = vld [vmem:[%s2257_s3] sm:$0xff]   ;;  %v35_v10 = vld [vmem:[%s2254_s0 + $0x38] sm:$0xff] }
   0x4   :  { %1378 = vmatprep.subr.bf16.mxu0 %v1425_v8 }
   0x5   :  { %1379 = vmatpush3.bf16.msra.mxu0 %v1425_v8 }
   0x6   :  { %55 = vperm.xlu1 %1418, %v31_v3   ;;  %45 = vperm.xlu0 %1417, %v29_v4  }
   0xa   :  { %1420 = vset.pattern.permute.xlu1 %v1755_v5  ;;  %1419 = vset.pattern.permute.xlu0 %v1755_v5 }
   0xb   :  { %109 = vperm.xlu1 %1420, %v29_v4   ;;  %105 = vperm.xlu0 %1419, %v28_v1  }
   0xf   :  { %113 = vperm.xlu1 %1420, %v30_v0   ;;  %117 = vperm.xlu0 %1419, %v31_v3  }
  0x13   :  { %1421 = vset.pattern.permute.xlu1 %v1754_v2  ;;  %1422 = vset.pattern.permute.xlu0 %v1754_v2 }
  0x14   :  { %60 = vperm.xlu1 %1421, %v32_v6   ;;  %65 = vperm.xlu0 %1422, %v33_v7  }
  0x18   :  { %70 = vperm.xlu1 %1421, %v34_v9   ;;  %1423 = vset.pattern.permute.xlu0 %v1755_v5 }
  0x19   :  { %121 = vperm.xlu0 %1423, %v32_v6  }
  0x1a   :  { %12 = vsyncpa [#allocation3], 0  ;;  %v1426_v11 = vld [vmem:[%s2259_s5 + $0x4] ss:$28 sps:$4 sm:$0xff]   ;;  %v1430_v12 = vld [vmem:[%s2259_s5 + $0xc] ss:$28 sps:$4 sm:$0xff]   ;;  %v78_v24 = vlaneseq }
  0x1b   :  { %v1431_v13 = vld [vmem:[%s2259_s5] ss:$28 sps:$4 sm:$0xff]   ;;  %662 = vmatprep.subr.bf16.mxu1 %v1426_v11  ;;  %735 = vmatprep.subr.bf16.mxu0 %v1430_v12  ;;  %v1437_v15 = vld [vmem:[%s2259_s5 + $0x38] ss:$28 sps:$4 sm:$0xff]   ;;  %v1443_v17 = vld [vmem:[%s2259_s5 + $0x70] ss:$28 sps:$4 sm:$0xff]  }
  0x1c   :  { %75 = vperm.xlu1 %1421, %v35_v10   ;;  %v1432_v14 = vld [vmem:[%s2259_s5 + $0x3c] ss:$28 sps:$4 sm:$0xff]   ;;  %663 = vmatpush1.bf16.msra.mxu1 %v1431_v13  ;;  %v1438_v16 = vld [vmem:[%s2259_s5 + $0x74] ss:$28 sps:$4 sm:$0xff]   ;;  %v1444_v18 = vld [vmem:[%s2259_s5 + $0xac] ss:$28 sps:$4 sm:$0xff]  }
  0x1d   :  { %133 = vperm.xlu0 %1423, %v35_v10   ;;  %664 = vmatprep.subr.bf16.mxu1 %v1432_v14  ;;  %v1449_v19 = vld [vmem:[%s2259_s5 + $0xa8] ss:$28 sps:$4 sm:$0xff]   ;;  %v1455_v21 = vld [vmem:[%s2259_s5 + $0xe0] ss:$28 sps:$4 sm:$0xff]   ;;  %v1461_v23 = vld [vmem:[%s2259_s5 + $0x118] ss:$28 sps:$4 sm:$0xff]  }
  0x1e   :  { %v1450_v20 = vld [vmem:[%s2259_s5 + $0xe4] ss:$28 sps:$4 sm:$0xff]   ;;  %v1456_v22 = vld [vmem:[%s2259_s5 + $0x11c] ss:$28 sps:$4 sm:$0xff]   ;;  %v1870_v25 = vshrl.u32 %v78_v24, 7  ;;  %vm183_vm0 = vcmask 130048  }
  0x1f   :  { %v36_v27 = vld [vmem:[%s2255_s1] sm:$0x3]  ;;  %v1428_v63 = vld [vmem:[%s2259_s5 + $0x8] ss:$28 sps:$4 sm:$0xff]   ;;  %v1442_v6 = vld [vmem:[%s2259_s5 + $0x7c] ss:$28 sps:$4 sm:$0xff]  }
  0x20   :  { %1424 = vset.pattern.permute.xlu1 %v1755_v5  ;;  %665 = vmatpush1.bf16.msra.mxu1 %v1437_v15  ;;  %v80_v26 = vsub.s32 0, %v1870_v25  ;;  %v138_v31 = vsub.s32 1, %v1870_v25  ;;  %v1298_v37 = vld [vmem:[%s2256_s2] ss:$0 sm:$0xff]  ;;  %v1440_v10 = vld [vmem:[%s2259_s5 + $0x78] ss:$28 sps:$4 sm:$0xff]  }
  0x21   :  { %125 = vperm.xlu1 %1424, %v33_v7   ;;  %666 = vmatprep.subr.bf16.mxu1 %v1438_v16  ;;  %v1436_v1 = vld [vmem:[%s2259_s5 + $0x44] ss:$28 sps:$4 sm:$0xff]   ;;  %v1448_v13 = vld [vmem:[%s2259_s5 + $0xb4] ss:$28 sps:$4 sm:$0xff]   ;;  %v1454_v24 = vld [vmem:[%s2259_s5 + $0xec] ss:$28 sps:$4 sm:$0xff]  }
  0x22   :  { %v81_v30 = vrot.slane %v36_v27, %v80_v26  ;;  %v1881_v36 = vrot.slane %v36_v27, %v138_v31  ;;  %v1434_v5 = vld [vmem:[%s2259_s5 + $0x40] ss:$28 sps:$4 sm:$0xff]  }
  0x24   :  { %667 = vmatpush1.bf16.msra.mxu1 %v1443_v17 }
  0x25   :  { %129 = vperm.xlu1 %1424, %v34_v9   ;;  %668 = vmatprep.subr.bf16.mxu1 %v1444_v18 }
  0x28   :  { %669 = vmatpush1.bf16.msra.mxu1 %v1449_v19  ;;  %v1446_v19 = vld [vmem:[%s2259_s5 + $0xb0] ss:$28 sps:$4 sm:$0xff]  }
  0x29   :  { %670 = vmatprep.subr.bf16.mxu1 %v1450_v20 }
  0x2c   :  { %671 = vmatpush1.bf16.msra.mxu1 %v1455_v21 }
  0x2d   :  { %672 = vmatprep.subr.bf16.mxu1 %v1456_v22 }
  0x30   :  { %673 = vmatpush1.bf16.msra.mxu1 %v1461_v23 }
  0x81   :  { %v51_v28 = vpop.permute.xlu1 %50  ;;  %v41_v29 = vpop.permute.xlu0 %40 }
  0x82   :  { %v82_v32 = vmul.f32 %v81_v30, %v41_v29  ;;  %v84_v40 = vmul.f32 %v81_v30, %v51_v28 }
  0x84   :  { %v96_v38 = vadd.f32 %v1298_v37, %v82_v32  ;;  %v98_v48 = vadd.f32 %v1298_v37, %v84_v40 }
  0x85   :  { %v56_v33 = vpop.permute.xlu1 %55  ;;  %v46_v34 = vpop.permute.xlu0 %45 }
  0x86   :  { %v83_v35 = vmul.f32 %v81_v30, %v46_v34  ;;  %v85_v41 = vmul.f32 %v81_v30, %v56_v33 }
  0x88   :  { %v97_v39 = vadd.f32 %v1298_v37, %v83_v35  ;;  %v99_v49 = vadd.f32 %v1298_v37, %v85_v41 }
  0x8a   :  { %v110_v42 = vpop.permute.xlu1 %109  ;;  %v106_v43 = vpop.permute.xlu0 %105 }
  0x8b   :  { %v141_v44 = vmul.f32 %v1881_v36, %v110_v42  ;;  %v140_v45 = vmul.f32 %v1881_v36, %v106_v43 }
  0x8d   :  { %v149_v46 = vadd.f32 %v141_v44, %v97_v39  ;;  %v148_v47 = vadd.f32 %v140_v45, %v96_v38  ;;  %v1460_v38 = vld [vmem:[%s2259_s5 + $0x124] ss:$28 sps:$4 sm:$0xff]   ;;  %v1466_v44 = vld [vmem:[%s2259_s5 + $0x15c] ss:$28 sps:$4 sm:$0xff]  }
  0x8e   :  { %v114_v50 = vpop.permute.xlu1 %113  ;;  %v118_v51 = vpop.permute.xlu0 %117  ;;  %v1464_v45 = vld [vmem:[%s2259_s5 + $0x158] ss:$28 sps:$4 sm:$0xff]  }
  0x8f   :  { %v157_v52 = vmax.f32 %v149_v46, 0.0  ;;  %v156_v53 = vmax.f32 %v148_v47, 0.0  ;;  %v142_v54 = vmul.f32 %v1881_v36, %v114_v50  ;;  %v143_v55 = vmul.f32 %v1881_v36, %v118_v51  ;;  %v1467_v46 = vld [vmem:[%s2259_s5 + $0x150] ss:$28 sps:$4 sm:$0xff]   ;;  %v1473_v50 = vld [vmem:[%s2259_s5 + $0x188] ss:$28 sps:$4 sm:$0xff]  }
  0x90   :  { %v1468_v47 = vld [vmem:[%s2259_s5 + $0x18c] ss:$28 sps:$4 sm:$0xff]   ;;  %v1476_v51 = vld [vmem:[%s2259_s5 + $0x14] ss:$28 sps:$4 sm:$0xff]  }
  0x91   :  { %v150_v56 = vadd.f32 %v142_v54, %v98_v48  ;;  %v151_v57 = vadd.f32 %v143_v55, %v99_v49  ;;  %v164_v58 = vpack.c.bf16 %v157_v52, %v156_v53  ;;  %v1472_v48 = vld [vmem:[%s2259_s5 + $0x194] ss:$28 sps:$4 sm:$0xff]   ;;  %v1299_v53 = vld [vmem:[%s2258_s4] ss:$0 sm:$0xff] }
  0x92   :  { %v1470_v49 = vld [vmem:[%s2259_s5 + $0x190] ss:$28 sps:$4 sm:$0xff]   ;;  %v1477_v52 = vld [vmem:[%s2259_s5 + $0x18] ss:$28 sps:$4 sm:$0xff]  }
  0x93   :  { %v158_v59 = vmax.f32 %v150_v56, 0.0  ;;  %v159_v60 = vmax.f32 %v151_v57, 0.0  ;;  %v61_v61 = vpop.permute.xlu1 %60  ;;  %1380 = vmatprep.mubr.msk.bf16.mxu0 %vm183_vm0, %v164_v58  ;;  %v66_v62 = vpop.permute.xlu0 %65 }
  0x94   :  { %v86_v7 = vmul.f32 %v81_v30, %v61_v61  ;;  %v87_v9 = vmul.f32 %v81_v30, %v66_v62 }
  0x95   :  { %v165_v0 = vpack.c.bf16 %v159_v60, %v158_v59 }
  0x96   :  { %v100_v15 = vadd.f32 %v1298_v37, %v86_v7  ;;  %v101_v16 = vadd.f32 %v1298_v37, %v87_v9  ;;  %v1481_v7 = vld [vmem:[%s2259_s5 + $0x50] ss:$28 sps:$4 sm:$0xff]   ;;  %v1484_v9 = vld [vmem:[%s2259_s5 + $0x84] ss:$28 sps:$4 sm:$0xff]  }
  0x97   :  { %v71_v3 = vpop.permute.xlu1 %70  ;;  %1381 = vmatmul.mubr.msk.bf16.vlgmr.msra.gmra.mrb[0].mxu0 %vm183_vm0, %v165_v0 }
  0x98   :  { %v122_v4 = vpop.permute.xlu0 %121  ;;  %736 = vmatpush1.bf16.msra.mxu0 %v1428_v63  ;;  %v88_v17 = vmul.f32 %v81_v30, %v71_v3 }
  0x99   :  { %737 = vmatprep.subr.bf16.mxu0 %v1436_v1  ;;  %v144_v11 = vmul.f32 %v1881_v36, %v122_v4  ;;  %v1474_v4 = vld [vmem:[%s2259_s5 + $0x10] ss:$28 sps:$4 sm:$0xff]  }
  0x9a   :  { %v102_v28 = vadd.f32 %v1298_v37, %v88_v17 }
  0x9b   :  { %v76_v8 = vpop.permute.xlu1 %75  ;;  %v152_v20 = vadd.f32 %v144_v11, %v100_v15  ;;  %v1482_v11 = vld [vmem:[%s2259_s5 + $0x80] ss:$28 sps:$4 sm:$0xff]   ;;  %v1492_v15 = vld [vmem:[%s2259_s5 + $0xf4] ss:$28 sps:$4 sm:$0xff]  }
  0x9c   :  { %738 = vmatpush1.bf16.msra.mxu0 %v1434_v5  ;;  %v89_v12 = vmul.f32 %v81_v30, %v76_v8  ;;  %v134_v14 = vpop.permute.xlu0 %133  ;;  %v1452_v30 = vld [vmem:[%s2259_s5 + $0xe8] ss:$28 sps:$4 sm:$0xff]  }
  0x9d   :  { %739 = vmatprep.subr.bf16.mxu0 %v1442_v6  ;;  %v147_v22 = vmul.f32 %v1881_v36, %v134_v14  ;;  %v160_v32 = vmax.f32 %v152_v20, 0.0  ;;  %v1480_v6 = vld [vmem:[%s2259_s5 + $0x4c] ss:$28 sps:$4 sm:$0xff]   ;;  %v1486_v14 = vld [vmem:[%s2259_s5 + $0xb8] ss:$28 sps:$4 sm:$0xff]  }
  0x9e   :  { %v103_v21 = vadd.f32 %v1298_v37, %v89_v12  ;;  %v1458_v37 = vld [vmem:[%s2259_s5 + $0x120] ss:$28 sps:$4 sm:$0xff]   ;;  %v1478_v8 = vld [vmem:[%s2259_s5 + $0x48] ss:$28 sps:$4 sm:$0xff]   ;;  %v1490_v20 = vld [vmem:[%s2259_s5 + $0xf0] ss:$28 sps:$4 sm:$0xff]  }
  0x9f   :  { %v1488_v12 = vld [vmem:[%s2259_s5 + $0xbc] ss:$28 sps:$4 sm:$0xff]  }
  0xa0   :  { %v126_v18 = vpop.permute.xlu1 %125  ;;  %740 = vmatpush1.bf16.msra.mxu0 %v1440_v10  ;;  %v155_v33 = vadd.f32 %v147_v22, %v103_v21  ;;  %v1485_v10 = vld [vmem:[%s2259_s5 + $0x88] ss:$28 sps:$4 sm:$0xff]  }
  0xa1   :  { %v145_v23 = vmul.f32 %v1881_v36, %v126_v18  ;;  %741 = vmatprep.subr.bf16.mxu0 %v1448_v13  ;;  %v1489_v13 = vld [vmem:[%s2259_s5 + $0xc0] ss:$28 sps:$4 sm:$0xff]  }
  0xa2   :  { %v163_v41 = vmax.f32 %v155_v33, 0.0  ;;  %v1494_v33 = vld [vmem:[%s2259_s5 + $0x128] ss:$28 sps:$4 sm:$0xff]  }
  0xa3   :  { %v153_v27 = vadd.f32 %v145_v23, %v101_v16  ;;  %v1493_v16 = vld [vmem:[%s2259_s5 + $0xf8] ss:$28 sps:$4 sm:$0xff]   ;;  %v1496_v23 = vld [vmem:[%s2259_s5 + $0x12c] ss:$28 sps:$4 sm:$0xff]  }
  0xa4   :  { %v130_v29 = vpop.permute.xlu1 %129  ;;  %742 = vmatpush1.bf16.msra.mxu0 %v1446_v19 }
  0xa5   :  { %v161_v34 = vmax.f32 %v153_v27, 0.0  ;;  %v146_v35 = vmul.f32 %v1881_v36, %v130_v29  ;;  %743 = vmatprep.subr.bf16.mxu0 %v1454_v24  ;;  %v1462_v36 = vld [vmem:[%s2259_s5 + $0x154] ss:$28 sps:$4 sm:$0xff]  }
  0xa6   :  { %674 = vmatprep.subr.bf16.mxu1 %v1462_v36  ;;  %v1502_v36 = vld [vmem:[%s2259_s5 + $0x198] ss:$28 sps:$4 sm:$0xff]  }
  0xa7   :  { %v166_v39 = vpack.c.bf16 %v161_v34, %v160_v32  ;;  %v154_v40 = vadd.f32 %v146_v35, %v102_v28  ;;  %675 = vmatpush1.bf16.msra.mxu1 %v1467_v46  ;;  %v1497_v28 = vld [vmem:[%s2259_s5 + $0x130] ss:$28 sps:$4 sm:$0xff]   ;;  %v353_v46 = vsub.s32 3, %v1870_v25 }
  0xa8   :  { %744 = vmatpush1.bf16.msra.mxu0 %v1452_v30  ;;  %676 = vmatprep.subr.bf16.mxu1 %v1468_v47 }
  0xa9   :  { %v162_v42 = vmax.f32 %v154_v40, 0.0  ;;  %1384 = vmatprep.mubr.msk.bf16.mxu0 %vm183_vm0, %v166_v39  ;;  %745 = vmatprep.subr.bf16.mxu0 %v1460_v38  ;;  %v1500_v40 = vld [vmem:[%s2259_s5 + $0x164] ss:$28 sps:$4 sm:$0xff]  }
  0xab   :  { %v167_v43 = vpack.c.bf16 %v163_v41, %v162_v42  ;;  %677 = vmatpush1.bf16.msra.mxu1 %v1473_v50  ;;  %v1501_v41 = vld [vmem:[%s2259_s5 + $0x168] ss:$28 sps:$4 sm:$0xff]   ;;  %v1504_v42 = vld [vmem:[%s2259_s5 + $0x19c] ss:$28 sps:$4 sm:$0xff]  }
  0xac   :  { %746 = vmatpush1.bf16.msra.mxu0 %v1458_v37  ;;  %808 = vmatprep.subr.bf16.mxu1 %v1476_v51  ;;  %v1498_v37 = vld [vmem:[%s2259_s5 + $0x160] ss:$28 sps:$4 sm:$0xff]  }
  0xad   :  { %1385 = vmatmul.mubr.msk.bf16.gmra.mrb[4].mxu0 %vm183_vm0, %v167_v43  ;;  %747 = vmatprep.subr.bf16.mxu0 %v1466_v44  ;;  %v1505_v43 = vld [vmem:[%s2259_s5 + $0x1a0] ss:$28 sps:$4 sm:$0xff]   ;;  %v349_v44 = vsub.s32 2, %v1870_v25 }
  0xae   :  { %767 = vmatprep.mubr.bf16.mxu0 %v1754_v2 }
  0xb0   :  { %748 = vmatpush1.bf16.msra.mxu0 %v1464_v45  ;;  %v2057_v45 = vld [vmem:[%s2260_s6] sm:$0x7f]  ;;  %s1756_s6 = smov [#allocation2]  }
  0xb1   :  { %749 = vmatprep.subr.bf16.mxu0 %v1472_v48  ;;  %v2063_v47 = vrot.slane %v2057_v45, %v80_v26  ;;  %v2066_v48 = vrot.slane %v2057_v45, %v349_v44  ;;  %s1287_s26 = sshll.u32 %s1756_s6, 4  ;;  %s1288_s26 = int_to_ptr.vmem [resolvable:$true] %s1287_s26 }
  0xb2   :  { %s1730_s27 = scalar_lea.vmem %s1288_s26, 7168  ;;  %p1735_p1 = scmp.lt.s32.totalorder %s1288_s26, %s1288_s26 }
  0xb3   :  { %p1731_p0 = scmp.ne.s32.totalorder %s1288_s26, %s1730_s27  ;;  %p1736_p2 = scmp.lt.s32.totalorder %s1730_s27, %s1730_s27 }
  0xb4   :  { %750 = vmatpush1.bf16.msra.mxu0 %v1470_v49  ;;  %v2074_v49 = vrot.slane %v2057_v45, %v353_v46 }
  0xb5   :  { %1388 = vmatprep.subr.bf16.mxu0 %v1477_v52  ;;  %p1737_p3 = por %p1736_p2, %p1735_p1 }
  0xb7   :  { %p1738_p4 = pnand %p1737_p3, %p1731_p0 }
 0x16a   :  { %v1382_v54 = vpop.f32.mrb[0].mxu0 }
 0x16b   :  { %v239_v55 = vadd.f32 %v1382_v54, %v1299_v53  ;;  %v230_v56 = vpop.f32.mrb[1].mxu0 }
 0x16c   :  { %v231_v57 = vadd.f32 %v1299_v53, %v230_v56  ;;  %v1383_v58 = vpop.f32.mrb[2].mxu0 }
 0x16d   :  { %v242_v59 = vadd.f32 %v1383_v58, %v1299_v53  ;;  %v233_v60 = vpop.f32.mrb[3].mxu0  ;;  %v263_v62 = vmax.f32 %v239_v55, 0.0 }
 0x16e   :  { %v234_v61 = vadd.f32 %v1299_v53, %v233_v60  ;;  %v261_v0 = vmax.f32 %v231_v57, 0.0 }
 0x16f   :  { %v264_v63 = vmax.f32 %v242_v59, 0.0 }
 0x170   :  { %v262_v1 = vmax.f32 %v234_v61, 0.0 }
 0x171   :  { %v1965_v3 = vpack.c.bf16 %v264_v63, %v263_v62 }
 0x172   :  { %v1970_v5 = vpack.c.bf16 %v262_v1, %v261_v0 }
 0x174   :  { %695 = vmatmul.mubr.bf16.vlgmr.msra.gmra.mrb[0].mxu1 %v1970_v5  ;;  %768 = vmatmul.mubr.bf16.vlgmr.msra.gmra.mrb[8].mxu0 %v1970_v5 }
 0x175   :  { %809 = vmatpush1.bf16.msra.mxu1 %v1474_v4  ;;  %704 = vmatprep.mubr.bf16.mxu1 %v1754_v2 }
 0x176   :  { %777 = vmatprep.mubr.bf16.mxu0 %v1754_v2  ;;  %1389 = vmatpush3.bf16.msra.mxu0 %v1477_v52 }
 0x177   :  { %810 = vmatprep.subr.bf16.mxu1 %v1480_v6  ;;  %1390 = vmatprep.subr.bf16.mxu0 %v1481_v7 }
 0x179   :  { %811 = vmatpush1.bf16.msra.mxu1 %v1478_v8 }
 0x17a   :  { %1391 = vmatpush3.bf16.msra.mxu0 %v1481_v7  ;;  %812 = vmatprep.subr.bf16.mxu1 %v1484_v9 }
 0x17b   :  { %1392 = vmatprep.subr.bf16.mxu0 %v1485_v10 }
 0x17c   :  { %705 = vmatmul.mubr.bf16.gmra.mrb[4].mxu1 %v1965_v3  ;;  %778 = vmatmul.mubr.bf16.gmra.mrb[12].mxu0 %v1965_v3 }
 0x17d   :  { %813 = vmatpush1.bf16.msra.mxu1 %v1482_v11  ;;  %714 = vmatprep.mubr.bf16.mxu1 %v1754_v2 }
 0x17e   :  { %1393 = vmatpush3.bf16.msra.mxu0 %v1485_v10  ;;  %814 = vmatprep.subr.bf16.mxu1 %v1488_v12 }
 0x17f   :  { %1394 = vmatprep.subr.bf16.mxu0 %v1489_v13  ;;  %787 = vmatprep.mubr.bf16.mxu0 %v1754_v2 }
 0x180   :  { %v1386_v17 = vpop.f32.mrb[4].mxu0 }
 0x181   :  { %v255_v18 = vadd.f32 %v1386_v17, %v1299_v53  ;;  %v246_v19 = vpop.f32.mrb[5].mxu0  ;;  %815 = vmatpush1.bf16.msra.mxu1 %v1486_v14 }
 0x182   :  { %v247_v21 = vadd.f32 %v1299_v53, %v246_v19  ;;  %v1387_v22 = vpop.f32.mrb[6].mxu0  ;;  %1395 = vmatpush3.bf16.msra.mxu0 %v1489_v13  ;;  %816 = vmatprep.subr.bf16.mxu1 %v1492_v15 }
 0x183   :  { %v258_v24 = vadd.f32 %v1387_v22, %v1299_v53  ;;  %v249_v27 = vpop.f32.mrb[7].mxu0  ;;  %1396 = vmatprep.subr.bf16.mxu0 %v1493_v16  ;;  %v267_v30 = vmax.f32 %v255_v18, 0.0 }
 0x184   :  { %v250_v29 = vadd.f32 %v1299_v53, %v249_v27  ;;  %v265_v34 = vmax.f32 %v247_v21, 0.0 }
 0x185   :  { %v268_v32 = vmax.f32 %v258_v24, 0.0  ;;  %817 = vmatpush1.bf16.msra.mxu1 %v1490_v20 }
 0x186   :  { %v266_v35 = vmax.f32 %v250_v29, 0.0  ;;  %1397 = vmatpush3.bf16.msra.mxu0 %v1493_v16  ;;  %818 = vmatprep.subr.bf16.mxu1 %v1496_v23 }
 0x187   :  { %v272_v38 = vpack.c.bf16 %v268_v32, %v267_v30  ;;  %1398 = vmatprep.subr.bf16.mxu0 %v1497_v28 }
 0x188   :  { %v271_v39 = vpack.c.bf16 %v266_v35, %v265_v34 }
 0x189   :  { %819 = vmatpush1.bf16.msra.mxu1 %v1494_v33 }
 0x18a   :  { %715 = vmatmul.mubr.bf16.gmra.mrb[8].mxu1 %v271_v39  ;;  %788 = vmatmul.mubr.bf16.gmra.mrb[16].mxu0 %v271_v39 }
 0x18b   :  { %1399 = vmatpush3.bf16.msra.mxu0 %v1497_v28  ;;  %724 = vmatprep.mubr.bf16.mxu1 %v1754_v2 }
 0x18c   :  { %797 = vmatprep.mubr.bf16.mxu0 %v1754_v2  ;;  %820 = vmatprep.subr.bf16.mxu1 %v1500_v40 }
 0x18d   :  { %821 = vmatpush1.bf16.msra.mxu1 %v1498_v37  ;;  %1400 = vmatprep.subr.bf16.mxu0 %v1501_v41 }
 0x18e   :  { %822 = vmatprep.subr.bf16.mxu1 %v1504_v42 }
 0x18f   :  { %1401 = vmatpush3.bf16.msra.mxu0 %v1501_v41 }
 0x190   :  { %1402 = vmatprep.subr.bf16.mxu0 %v1505_v43 }
 0x191   :  { %823 = vmatpush1.bf16.msra.mxu1 %v1502_v36 }
 0x192   :  { %725 = vmatmul.mubr.bf16.gmra.mrb[12].mxu1 %v272_v38  ;;  %798 = vmatmul.mubr.bf16.gmra.mrb[20].mxu0 %v272_v38 }
 0x193   :  { %1404 = vmatprep.mubr.bf16.mxu0 %v1970_v5  ;;  %1403 = vmatpush3.bf16.msra.mxu0 %v1505_v43 }
 0x194   :  { %840 = vmatprep.mubr.bf16.mxu1 %v1754_v2 }
 0x19a   :  { %841 = vmatmul.mubr.bf16.vlgmr.msra.gmra.mrb[16].mxu1 %v1970_v5  ;;  %1405 = vmatmul.mubr.bf16.vlgmr.msra.gmra.mrb[24].mxu0 %v1965_v3 }
 0x19b   :  { %1408 = vmatprep.mubr.bf16.mxu0 %v271_v39  ;;  %850 = vmatprep.mubr.bf16.mxu1 %v1754_v2 }
 0x1a2   :  { %851 = vmatmul.mubr.bf16.gmra.mrb[20].mxu1 %v1965_v3  ;;  %1409 = vmatmul.mubr.bf16.gmra.mrb[28].mxu0 %v272_v38 }
 0x1a3   :  { %860 = vmatprep.mubr.bf16.mxu1 %v1754_v2 }
 0x1aa   :  { %861 = vmatmul.mubr.bf16.gmra.mrb[24].mxu1 %v271_v39 }
 0x1ab   :  { %870 = vmatprep.mubr.bf16.mxu1 %v1754_v2  ;;  %v2071_v2 = vrot.slane %v2057_v45, %v138_v31 }
 0x1b2   :  { %871 = vmatmul.mubr.bf16.gmra.mrb[28].mxu1 %v272_v38 }
 0x247   :  { %v696_v50 = vpop.f32.mrb[0].mxu1  ;;  %v769_v51 = vpop.f32.mrb[8].mxu0 }
 0x248   :  { %v697_v52 = vadd.f32 %v696_v50, %v2063_v47  ;;  %v770_v53 = vadd.f32 %v769_v51, %v2066_v48  ;;  %v698_v54 = vpop.f32.mrb[1].mxu1  ;;  %v771_v26 = vpop.f32.mrb[9].mxu0 }
 0x249   :  { %v699_v55 = vadd.f32 %v698_v54, %v2071_v2  ;;  %v772_v56 = vadd.f32 %v771_v26, %v2074_v49  ;;  %v700_v57 = vpop.f32.mrb[2].mxu1  ;;  %v773_v58 = vpop.f32.mrb[10].mxu0 }
 0x24a   :  { %v946_v59 = vsub.f32 0.0, %v697_v52  ;;  %v948_v31 = vsub.f32 0.0, %v770_v53  ;;  %v701_v60 = vadd.f32 %v700_v57, %v2063_v47  ;;  %v774_v61 = vadd.f32 %v773_v58, %v2066_v48  ;;  %v702_v62 = vpop.f32.mrb[3].mxu1  ;;  %v775_v63 = vpop.f32.mrb[11].mxu0 }
 0x24b   :  { %v947_v0 = vsub.f32 0.0, %v699_v55  ;;  %v949_v1 = vsub.f32 0.0, %v772_v56  ;;  %v703_v3 = vadd.f32 %v702_v62, %v2071_v2  ;;  %v776_v4 = vadd.f32 %v775_v63, %v2074_v49 }
 0x24c   :  { %v1002_v5 = vmul.f32 1.442695, %v946_v59  ;;  %v1006_v6 = vmul.f32 1.442695, %v948_v31  ;;  %v953_v7 = vsub.f32 0.0, %v701_v60  ;;  %v955_v8 = vsub.f32 0.0, %v774_v61 }
 0x24d   :  { %v1004_v9 = vmul.f32 1.442695, %v947_v0  ;;  %v1008_v10 = vmul.f32 1.442695, %v949_v1  ;;  %v954_v11 = vsub.f32 0.0, %v703_v3  ;;  %v956_v12 = vsub.f32 0.0, %v776_v4 }
 0x24e   :  { %1506 = vpow2.f32 %v1002_v5  ;;  %v1016_v13 = vmul.f32 1.442695, %v953_v7  ;;  %v1020_v14 = vmul.f32 1.442695, %v955_v8 }
 0x24f   :  { %1508 = vpow2.f32 %v1006_v6  ;;  %v706_v15 = vpop.f32.mrb[4].mxu1  ;;  %v779_v16 = vpop.f32.mrb[12].mxu0  ;;  %v1018_v17 = vmul.f32 1.442695, %v954_v11  ;;  %v1022_v22 = vmul.f32 1.442695, %v956_v12 }
 0x250   :  { %1510 = vpow2.f32 %v1004_v9  ;;  %v707_v18 = vadd.f32 %v706_v15, %v2063_v47  ;;  %v780_v19 = vadd.f32 %v779_v16, %v2066_v48  ;;  %v708_v20 = vpop.f32.mrb[5].mxu1  ;;  %v781_v21 = vpop.f32.mrb[13].mxu0 }
 0x251   :  { %1512 = vpow2.f32 %v1008_v10  ;;  %v709_v23 = vadd.f32 %v708_v20, %v2071_v2  ;;  %v782_v24 = vadd.f32 %v781_v21, %v2074_v49  ;;  %v710_v27 = vpop.f32.mrb[6].mxu1  ;;  %v783_v28 = vpop.f32.mrb[14].mxu0 }
 0x252   :  { %1514 = vpow2.f32 %v1016_v13  ;;  %v960_v29 = vsub.f32 0.0, %v707_v18  ;;  %v962_v30 = vsub.f32 0.0, %v780_v19  ;;  %v711_v32 = vadd.f32 %v710_v27, %v2063_v47  ;;  %v712_v33 = vpop.f32.mrb[7].mxu1  ;;  %v785_v34 = vpop.f32.mrb[15].mxu0 }
 0x253   :  { %1516 = vpow2.f32 %v1020_v14  ;;  %v961_v35 = vsub.f32 0.0, %v709_v23  ;;  %v963_v38 = vsub.f32 0.0, %v782_v24  ;;  %v784_v44 = vadd.f32 %v783_v28, %v2066_v48 }
 0x254   :  { %1518 = vpow2.f32 %v1018_v17  ;;  %v1030_v39 = vmul.f32 1.442695, %v960_v29  ;;  %v1034_v40 = vmul.f32 1.442695, %v962_v30  ;;  %v967_v37 = vsub.f32 0.0, %v711_v32 }
 0x255   :  { %1520 = vpow2.f32 %v1022_v22  ;;  %v1032_v41 = vmul.f32 1.442695, %v961_v35  ;;  %v1036_v42 = vmul.f32 1.442695, %v963_v38  ;;  %v713_v53 = vadd.f32 %v712_v33, %v2071_v2 }
 0x256   :  { %1522 = vpow2.f32 %v1030_v39  ;;  %v1044_v43 = vmul.f32 1.442695, %v967_v37  ;;  %v969_v57 = vsub.f32 0.0, %v784_v44  ;;  %v786_v31 = vadd.f32 %v785_v34, %v2074_v49 }
 0x257   :  { %1524 = vpow2.f32 %v1034_v40  ;;  %v968_v0 = vsub.f32 0.0, %v713_v53 }
 0x258   :  { %v1507_v36 = vpop.eup %1506  ;;  %1526 = vpow2.f32 %v1032_v41  ;;  %v1048_v12 = vmul.f32 1.442695, %v969_v57  ;;  %v970_v17 = vsub.f32 0.0, %v786_v31 }
 0x259   :  { %v1509_v46 = vpop.eup %1508  ;;  %v1114_v50 = vadd.f32 1.0, %v1507_v36  ;;  %1528 = vpow2.f32 %v1036_v42  ;;  %v1046_v21 = vmul.f32 1.442695, %v968_v0 }
 0x25a   :  { %v1511_v51 = vpop.eup %1510  ;;  %v1116_v52 = vadd.f32 1.0, %v1509_v46  ;;  %1530 = vpow2.f32 %v1044_v43  ;;  %v1050_v42 = vmul.f32 1.442695, %v970_v17 }
 0x25b   :  { %v1513_v54 = vpop.eup %1512  ;;  %1532 = vrcp.f32 %v1114_v50  ;;  %v1115_v26 = vadd.f32 1.0, %v1511_v51 }
 0x25c   :  { %v1515_v55 = vpop.eup %1514  ;;  %1534 = vrcp.f32 %v1116_v52  ;;  %v1117_v56 = vadd.f32 1.0, %v1513_v54 }
 0x25d   :  { %v1517_v58 = vpop.eup %1516  ;;  %1536 = vrcp.f32 %v1115_v26  ;;  %v1121_v59 = vadd.f32 1.0, %v1515_v55  ;;  %v716_v60 = vpop.f32.mrb[8].mxu1 }
 0x25e   :  { %v789_v61 = vpop.f32.mrb[16].mxu0  ;;  %v1519_v62 = vpop.eup %1518  ;;  %1538 = vrcp.f32 %v1117_v56  ;;  %v1123_v63 = vadd.f32 1.0, %v1517_v58  ;;  %v717_v6 = vadd.f32 %v716_v60, %v2063_v47 }
 0x25f   :  { %v718_v1 = vpop.f32.mrb[9].mxu1  ;;  %v791_v3 = vpop.f32.mrb[17].mxu0  ;;  %1540 = vrcp.f32 %v1121_v59  ;;  %v1122_v5 = vadd.f32 1.0, %v1519_v62  ;;  %v790_v7 = vadd.f32 %v789_v61, %v2066_v48 }
 0x260   :  { %v1521_v4 = vpop.eup %1520  ;;  %v720_v8 = vpop.f32.mrb[10].mxu1  ;;  %1542 = vrcp.f32 %v1123_v63  ;;  %v719_v18 = vadd.f32 %v718_v1, %v2071_v2  ;;  %v792_v22 = vadd.f32 %v791_v3, %v2074_v49  ;;  %v974_v27 = vsub.f32 0.0, %v717_v6 }
 0x261   :  { %v793_v9 = vpop.f32.mrb[18].mxu0  ;;  %v1523_v10 = vpop.eup %1522  ;;  %v1124_v11 = vadd.f32 1.0, %v1521_v4  ;;  %1544 = vrcp.f32 %v1122_v5  ;;  %v976_v28 = vsub.f32 0.0, %v790_v7  ;;  %v721_v32 = vadd.f32 %v720_v8, %v2063_v47 }
 0x262   :  { %v722_v13 = vpop.f32.mrb[11].mxu1  ;;  %v795_v14 = vpop.f32.mrb[19].mxu0  ;;  %v1128_v16 = vadd.f32 1.0, %v1523_v10  ;;  %v794_v33 = vadd.f32 %v793_v9, %v2066_v48  ;;  %v975_v38 = vsub.f32 0.0, %v719_v18  ;;  %v977_v43 = vsub.f32 0.0, %v792_v22 }
 0x263   :  { %v1525_v15 = vpop.eup %1524  ;;  %1546 = vrcp.f32 %v1124_v11  ;;  %v723_v39 = vadd.f32 %v722_v13, %v2071_v2  ;;  %v796_v36 = vadd.f32 %v795_v14, %v2074_v49  ;;  %v1058_v51 = vmul.f32 1.442695, %v974_v27 }
 0x264   :  { %v1527_v19 = vpop.eup %1526  ;;  %v1130_v20 = vadd.f32 1.0, %v1525_v15  ;;  %1548 = vrcp.f32 %v1128_v16  ;;  %v981_v52 = vsub.f32 0.0, %v721_v32  ;;  %v1062_v56 = vmul.f32 1.442695, %v976_v28 }
 0x265   :  { %v1529_v23 = vpop.eup %1528  ;;  %v1129_v24 = vadd.f32 1.0, %v1527_v19  ;;  %v726_v40 = vpop.f32.mrb[12].mxu1  ;;  %v983_v57 = vsub.f32 0.0, %v794_v33  ;;  %v1060_v60 = vmul.f32 1.442695, %v975_v38  ;;  %v982_v61 = vsub.f32 0.0, %v723_v39 }
 0x266   :  { %v1531_v29 = vpop.eup %1530  ;;  %1550 = vrcp.f32 %v1130_v20  ;;  %v1131_v30 = vadd.f32 1.0, %v1529_v23  ;;  %v799_v37 = vpop.f32.mrb[20].mxu0  ;;  %v727_v53 = vadd.f32 %v726_v40, %v2063_v47  ;;  %v1064_v0 = vmul.f32 1.442695, %v977_v43 }
 0x267   :  { %v1533_v34 = vpop.eup %1532  ;;  %1552 = vrcp.f32 %v1129_v24  ;;  %v1135_v35 = vadd.f32 1.0, %v1531_v29  ;;  %v2100_v44 = vpop.f32.mrb[13].mxu1  ;;  %v800_v58 = vadd.f32 %v799_v37, %v2066_v48  ;;  %v984_v1 = vsub.f32 0.0, %v796_v36 }
 0x268   :  { %v1535_v41 = vpop.eup %1534  ;;  %1226 = vst [vmem:[#allocation2] sm:$0xff] %v1533_v34  ;;  %1554 = vrcp.f32 %v1131_v30  ;;  %v2102_v46 = vpop.f32.mrb[21].mxu0  ;;  %v1072_v4 = vmul.f32 1.442695, %v981_v52  ;;  %v988_v5 = vsub.f32 0.0, %v727_v53  ;;  %v357_v32 = vsub.s32 4, %v1870_v25 }
 0x269   :  { %v1537_v50 = vpop.eup %1536  ;;  %1228 = vst [vmem:[#allocation2 + $0x10] sm:$0xff] %v1535_v41  ;;  %1556 = vrcp.f32 %v1135_v35  ;;  %v2105_v54 = vpop.f32.mrb[14].mxu1  ;;  %v1076_v7 = vmul.f32 1.442695, %v983_v57  ;;  %v990_v8 = vsub.f32 0.0, %v800_v58  ;;  %v729_v35 = vadd.f32 %v2100_v44, %v2071_v2 }
 0x26a   :  { %v2107_v26 = vpop.f32.mrb[22].mxu0  ;;  %v1539_v55 = vpop.eup %1538  ;;  %1227 = vst [vmem:[#allocation2 + $0x8] sm:$0xff] %v1537_v50  ;;  %1558 = vpow2.f32 %v1048_v12  ;;  %v1074_v10 = vmul.f32 1.442695, %v982_v61  ;;  %v1078_v14 = vmul.f32 1.442695, %v984_v1  ;;  %v802_v37 = vadd.f32 %v2102_v46, %v2074_v49 }
 0x26b   :  { %v2110_v59 = vpop.f32.mrb[15].mxu1  ;;  %v1541_v31 = vpop.eup %1540  ;;  %1229 = vst [vmem:[#allocation2 + $0x18] sm:$0xff] %v1539_v55  ;;  %1560 = vpow2.f32 %v1046_v21  ;;  %v1086_v17 = vmul.f32 1.442695, %v988_v5  ;;  %v1090_v20 = vmul.f32 1.442695, %v990_v8  ;;  %v731_v50 = vadd.f32 %v2105_v54, %v2063_v47 }
 0x26c   :  { %v2112_v62 = vpop.f32.mrb[23].mxu0  ;;  %v1543_v63 = vpop.eup %1542  ;;  %1233 = vst [vmem:[#allocation2 + $0x38] sm:$0xff] %v1541_v31  ;;  %1562 = vpow2.f32 %v1050_v42  ;;  %v365_v38 = vsub.s32 6, %v1870_v25  ;;  %v361_v41 = vsub.s32 5, %v1870_v25  ;;  %v804_v46 = vadd.f32 %v2107_v26, %v2066_v48 }
 0x26d   :  { %v1545_v3 = vpop.eup %1544  ;;  %1235 = vst [vmem:[#allocation2 + $0x48] sm:$0xff] %v1543_v63  ;;  %1564 = vpow2.f32 %v1058_v51  ;;  %v2114_v11 = vpop.f32.mrb[16].mxu1  ;;  %v2148_v25 = vrot.slane %v2057_v45, %v357_v32  ;;  %v989_v54 = vsub.f32 0.0, %v729_v35  ;;  %v991_v26 = vsub.f32 0.0, %v802_v37 }
 0x26e   :  { %v1547_v6 = vpop.eup %1546  ;;  %1234 = vst [vmem:[#allocation2 + $0x40] sm:$0xff] %v1545_v3  ;;  %1566 = vpow2.f32 %v1062_v56  ;;  %v2116_v12 = vpop.f32.mrb[24].mxu0  ;;  %v2155_v58 = vrot.slane %v2057_v45, %v365_v38  ;;  %v2162_v63 = vrot.slane %v2057_v45, %v361_v41  ;;  %v733_v5 = vadd.f32 %v2110_v59, %v2071_v2 }
 0x26f   :  { %v1549_v9 = vpop.eup %1548  ;;  %1236 = vst [vmem:[#allocation2 + $0x50] sm:$0xff] %v1547_v6  ;;  %1568 = vpow2.f32 %v1060_v60  ;;  %v2118_v15 = vpop.f32.mrb[17].mxu1  ;;  %v997_v8 = vsub.f32 0.0, %v804_v46 }
 0x270   :  { %v1551_v13 = vpop.eup %1550  ;;  %1240 = vst [vmem:[#allocation2 + $0x70] sm:$0xff] %v1549_v9  ;;  %1570 = vpow2.f32 %v1064_v0  ;;  %v2120_v18 = vpop.f32.mrb[25].mxu0  ;;  %v806_v9 = vadd.f32 %v2112_v62, %v2074_v49  ;;  %v924_v2 = vadd.f32 %v2116_v12, %v2155_v58  ;;  %v996_v49 = vsub.f32 0.0, %v733_v5 }
 0x271   :  { %v1553_v16 = vpop.eup %1552  ;;  %1242 = vst [vmem:[#allocation2 + $0x80] sm:$0xff] %v1551_v13  ;;  %1572 = vpow2.f32 %v1072_v4  ;;  %v2122_v21 = vpop.f32.mrb[18].mxu1  ;;  %v995_v4 = vsub.f32 0.0, %v731_v50  ;;  %v1088_v13 = vmul.f32 1.442695, %v989_v54  ;;  %v845_v62 = vadd.f32 %v2118_v15, %v2162_v63 }
 0x272   :  { %v1555_v19 = vpop.eup %1554  ;;  %1241 = vst [vmem:[#allocation2 + $0x78] sm:$0xff] %v1553_v16  ;;  %1574 = vpow2.f32 %v1076_v7  ;;  %v2124_v22 = vpop.f32.mrb[26].mxu0  ;;  %v916_v32 = vadd.f32 %v2120_v18, %v2155_v58  ;;  %v847_v38 = vadd.f32 %v2122_v21, %v2148_v25  ;;  %v966_v37 = vsub.f32 0.0, %v924_v2 }
 0x273   :  { %v1557_v23 = vpop.eup %1556  ;;  %1243 = vst [vmem:[#allocation2 + $0x88] sm:$0xff] %v1555_v19  ;;  %1576 = vpow2.f32 %v1074_v10  ;;  %v2126_v24 = vpop.f32.mrb[19].mxu1  ;;  %v1092_v19 = vmul.f32 1.442695, %v991_v26  ;;  %v927_v18 = vadd.f32 %v2124_v22, %v2155_v58 }
 0x274   :  { %v2128_v27 = vpop.f32.mrb[27].mxu0  ;;  %v1559_v28 = vpop.eup %1558  ;;  %1247 = vst [vmem:[#allocation2 + $0xa8] sm:$0xff] %v1557_v23  ;;  %1578 = vpow2.f32 %v1078_v14  ;;  %v843_v14 = vadd.f32 %v2114_v11, %v2148_v25  ;;  %v849_v50 = vadd.f32 %v2126_v24, %v2162_v63  ;;  %v1042_v22 = vmul.f32 1.442695, %v966_v37 }
 0x275   :  { %v1561_v29 = vpop.eup %1560  ;;  %v1137_v30 = vadd.f32 1.0, %v1559_v28  ;;  %1580 = vpow2.f32 %v1086_v17  ;;  %v2137_v42 = vpop.f32.mrb[20].mxu1 }
 0x276   :  { %v1563_v33 = vpop.eup %1562  ;;  %v1136_v34 = vadd.f32 1.0, %v1561_v29  ;;  %1582 = vpow2.f32 %v1090_v20  ;;  %v2141_v51 = vpop.f32.mrb[28].mxu0  ;;  %v950_v35 = vsub.f32 0.0, %v843_v14 }
 0x277   :  { %v1565_v39 = vpop.eup %1564  ;;  %1584 = vrcp.f32 %v1137_v30  ;;  %v1138_v40 = vadd.f32 1.0, %v1563_v33  ;;  %v2143_v44 = vpop.f32.mrb[21].mxu1  ;;  %v998_v30 = vsub.f32 0.0, %v806_v9 }
 0x278   :  { %v1567_v43 = vpop.eup %1566  ;;  %1586 = vrcp.f32 %v1136_v34  ;;  %v1142_v36 = vadd.f32 1.0, %v1565_v39  ;;  %v2150_v55 = vpop.f32.mrb[29].mxu0  ;;  %v1100_v34 = vmul.f32 1.442695, %v995_v4 }
 0x279   :  { %v1569_v52 = vpop.eup %1568  ;;  %1588 = vrcp.f32 %v1138_v40  ;;  %v1144_v53 = vadd.f32 1.0, %v1567_v43  ;;  %v2152_v56 = vpop.f32.mrb[22].mxu1  ;;  %v1104_v40 = vmul.f32 1.442695, %v997_v8  ;;  %v1102_v43 = vmul.f32 1.442695, %v996_v49 }
 0x27a   :  { %v1571_v57 = vpop.eup %1570  ;;  %1590 = vrcp.f32 %v1142_v36  ;;  %v1143_v47 = vadd.f32 1.0, %v1569_v52  ;;  %v2157_v31 = vpop.f32.mrb[30].mxu0  ;;  %v951_v36 = vsub.f32 0.0, %v845_v62  ;;  %v1106_v21 = vmul.f32 1.442695, %v998_v30 }
 0x27b   :  { %v2159_v60 = vpop.f32.mrb[23].mxu1  ;;  %v1573_v61 = vpop.eup %1572  ;;  %1592 = vrcp.f32 %v1144_v53  ;;  %v1145_v48 = vadd.f32 1.0, %v1571_v57  ;;  %v952_v53 = vsub.f32 0.0, %v916_v32  ;;  %v1010_v57 = vmul.f32 1.442695, %v950_v35 }
 0x27c   :  { %v2164_v0 = vpop.f32.mrb[31].mxu0  ;;  %v1575_v1 = vpop.eup %1574  ;;  %1594 = vrcp.f32 %v1143_v47  ;;  %v1149_v3 = vadd.f32 1.0, %v1573_v61  ;;  %v957_v47 = vsub.f32 0.0, %v847_v38  ;;  %v973_v61 = vsub.f32 0.0, %v927_v18 }
 0x27d   :  { %v1577_v6 = vpop.eup %1576  ;;  %1596 = vrcp.f32 %v1145_v48  ;;  %v1151_v7 = vadd.f32 1.0, %v1575_v1  ;;  %v2174_v59 = vpop.f32.mrb[24].mxu1  ;;  %v1012_v24 = vmul.f32 1.442695, %v951_v36  ;;  %v958_v1 = vsub.f32 0.0, %v849_v50 }
 0x27e   :  { %v1579_v10 = vpop.eup %1578  ;;  %1598 = vrcp.f32 %v1149_v3  ;;  %v1150_v45 = vadd.f32 1.0, %v1577_v6  ;;  %v2178_v28 = vpop.f32.mrb[25].mxu1  ;;  %v1014_v5 = vmul.f32 1.442695, %v952_v53  ;;  %v1024_v8 = vmul.f32 1.442695, %v957_v47 }
 0x27f   :  { %v1581_v16 = vpop.eup %1580  ;;  %1600 = vrcp.f32 %v1151_v7  ;;  %v1152_v17 = vadd.f32 1.0, %v1579_v10  ;;  %v2182_v33 = vpop.f32.mrb[26].mxu1  ;;  %v1026_v14 = vmul.f32 1.442695, %v958_v1  ;;  %v855_v18 = vadd.f32 %v2143_v44, %v2162_v63 }
 0x280   :  { %v1583_v20 = vpop.eup %1582  ;;  %1602 = vrcp.f32 %v1150_v45  ;;  %v1156_v23 = vadd.f32 1.0, %v1581_v16  ;;  %v2186_v15 = vpop.f32.mrb[27].mxu1  ;;  %v1056_v45 = vmul.f32 1.442695, %v973_v61  ;;  %v932_v50 = vadd.f32 %v2150_v55, %v2155_v58 }
 0x281   :  { %v1585_v29 = vpop.eup %1584  ;;  %1604 = vrcp.f32 %v1152_v17  ;;  %v1158_v11 = vadd.f32 1.0, %v1583_v20  ;;  %v943_v44 = vadd.f32 %v2157_v31, %v2155_v58  ;;  %v965_v61 = vsub.f32 0.0, %v855_v18 }
 0x282   :  { %v1587_v12 = vpop.eup %1586  ;;  %1249 = vst [vmem:[#allocation2 + $0xb8] sm:$0xff] %v1585_v29  ;;  %1606 = vrcp.f32 %v1156_v23  ;;  %v853_v23 = vadd.f32 %v2137_v42, %v2148_v25  ;;  %v940_v42 = vadd.f32 %v2141_v51, %v2155_v58  ;;  %v857_v51 = vadd.f32 %v2152_v56, %v2148_v25 }
 0x283   :  { %v1589_v39 = vpop.eup %1588  ;;  %1248 = vst [vmem:[#allocation2 + $0xb0] sm:$0xff] %v1587_v12  ;;  %1608 = vrcp.f32 %v1158_v11  ;;  %v859_v55 = vadd.f32 %v2159_v60, %v2162_v63  ;;  %v980_v1 = vsub.f32 0.0, %v932_v50  ;;  %v935_v56 = vadd.f32 %v2164_v0, %v2155_v58 }
 0x284   :  { %v1591_v41 = vpop.eup %1590  ;;  %1250 = vst [vmem:[#allocation2 + $0xc0] sm:$0xff] %v1589_v39  ;;  %1610 = vpow2.f32 %v1088_v13  ;;  %v994_v47 = vsub.f32 0.0, %v940_v42  ;;  %v863_v31 = vadd.f32 %v2174_v59, %v2148_v25  ;;  %v865_v60 = vadd.f32 %v2178_v28, %v2162_v63 }
 0x285   :  { %v1593_v52 = vpop.eup %1592  ;;  %1254 = vst [vmem:[#allocation2 + $0xe0] sm:$0xff] %v1591_v41  ;;  %1612 = vpow2.f32 %v1092_v19  ;;  %v2192_v48 = vpop.f32.mrb[28].mxu1  ;;  %v919_v19 = vadd.f32 %v2128_v27, %v2155_v58  ;;  %v964_v27 = vsub.f32 0.0, %v853_v23  ;;  %v972_v58 = vsub.f32 0.0, %v859_v55 }
 0x286   :  { %v1595_v46 = vpop.eup %1594  ;;  %1256 = vst [vmem:[#allocation2 + $0xf0] sm:$0xff] %v1593_v52  ;;  %1614 = vpow2.f32 %v1100_v34  ;;  %v2194_v3 = vpop.f32.mrb[29].mxu1  ;;  %v867_v0 = vadd.f32 %v2182_v33, %v2148_v25  ;;  %v1070_v59 = vmul.f32 1.442695, %v980_v1 }
 0x287   :  { %v1597_v54 = vpop.eup %1596  ;;  %1255 = vst [vmem:[#allocation2 + $0xe8] sm:$0xff] %v1595_v46  ;;  %1616 = vpow2.f32 %v1104_v40  ;;  %v2196_v6 = vpop.f32.mrb[30].mxu1  ;;  %v959_v12 = vsub.f32 0.0, %v919_v19  ;;  %v1038_v53 = vmul.f32 1.442695, %v964_v27  ;;  %v869_v19 = vadd.f32 %v2186_v15, %v2162_v63 }
 0x288   :  { %v1599_v26 = vpop.eup %1598  ;;  %1257 = vst [vmem:[#allocation2 + $0xf8] sm:$0xff] %v1597_v54  ;;  %1618 = vpow2.f32 %v1102_v43  ;;  %v2198_v9 = vpop.f32.mrb[31].mxu1  ;;  %v1054_v33 = vmul.f32 1.442695, %v972_v58 }
 0x289   :  { %v1601_v4 = vpop.eup %1600  ;;  %1261 = vst [vmem:[#allocation2 + $0x118] sm:$0xff] %v1599_v26  ;;  %1620 = vpow2.f32 %v1106_v21  ;;  %v1028_v36 = vmul.f32 1.442695, %v959_v12  ;;  %v986_v15 = vsub.f32 0.0, %v869_v19 }
 0x28a   :  { %v1603_v7 = vpop.eup %1602  ;;  %1263 = vst [vmem:[#allocation2 + $0x128] sm:$0xff] %v1601_v4  ;;  %1622 = vpow2.f32 %v1010_v57 }
 0x28b   :  { %v1605_v10 = vpop.eup %1604  ;;  %1262 = vst [vmem:[#allocation2 + $0x120] sm:$0xff] %v1603_v7  ;;  %1624 = vpow2.f32 %v1042_v22  ;;  %v971_v7 = vsub.f32 0.0, %v857_v51 }
 0x28c   :  { %v1607_v13 = vpop.eup %1606  ;;  %1264 = vst [vmem:[#allocation2 + $0x130] sm:$0xff] %v1605_v10  ;;  %1626 = vpow2.f32 %v1012_v24  ;;  %v1098_v10 = vmul.f32 1.442695, %v994_v47 }
 0x28d   :  { %v1609_v16 = vpop.eup %1608  ;;  %1268 = vst [vmem:[#allocation2 + $0x150] sm:$0xff] %v1607_v13  ;;  %1628 = vpow2.f32 %v1014_v5  ;;  %v1052_v28 = vmul.f32 1.442695, %v971_v7 }
 0x28e   :  { %v1611_v17 = vpop.eup %1610  ;;  %1270 = vst [vmem:[#allocation2 + $0x160] sm:$0xff] %v1609_v16  ;;  %1630 = vpow2.f32 %v1024_v8 }
 0x28f   :  { %v1613_v2 = vpop.eup %1612  ;;  %v1157_v20 = vadd.f32 1.0, %v1611_v17  ;;  %1632 = vpow2.f32 %v1056_v45  ;;  %v1001_v45 = vsub.f32 0.0, %v943_v44  ;;  %v987_v17 = vsub.f32 0.0, %v935_v56 }
 0x290   :  { %v1615_v49 = vpop.eup %1614  ;;  %v1159_v62 = vadd.f32 1.0, %v1613_v2  ;;  %1634 = vpow2.f32 %v1026_v14  ;;  %v1040_v14 = vmul.f32 1.442695, %v965_v61  ;;  %v875_v44 = vadd.f32 %v2194_v3, %v2162_v63 }
 0x291   :  { %v1617_v29 = vpop.eup %1616  ;;  %1636 = vrcp.f32 %v1157_v20  ;;  %v1163_v11 = vadd.f32 1.0, %v1615_v49  ;;  %v978_v20 = vsub.f32 0.0, %v863_v31  ;;  %v1112_v49 = vmul.f32 1.442695, %v1001_v45 }
 0x292   :  { %v1619_v30 = vpop.eup %1618  ;;  %1638 = vrcp.f32 %v1159_v62  ;;  %v1165_v32 = vadd.f32 1.0, %v1617_v29  ;;  %v979_v62 = vsub.f32 0.0, %v865_v60  ;;  %v877_v61 = vadd.f32 %v2196_v6, %v2148_v25 }
 0x293   :  { %v1621_v34 = vpop.eup %1620  ;;  %1640 = vrcp.f32 %v1163_v11  ;;  %v1164_v35 = vadd.f32 1.0, %v1619_v30  ;;  %v985_v11 = vsub.f32 0.0, %v867_v0  ;;  %v993_v3 = vsub.f32 0.0, %v875_v44 }
 0x294   :  { %v1623_v38 = vpop.eup %1622  ;;  %1642 = vrcp.f32 %v1165_v32  ;;  %v1166_v39 = vadd.f32 1.0, %v1621_v34  ;;  %v1084_v32 = vmul.f32 1.442695, %v987_v17  ;;  %v1066_v34 = vmul.f32 1.442695, %v978_v20 }
 0x295   :  { %v1625_v40 = vpop.eup %1624  ;;  %1644 = vrcp.f32 %v1164_v35  ;;  %v1118_v37 = vadd.f32 1.0, %v1623_v38  ;;  %v1068_v27 = vmul.f32 1.442695, %v979_v62 }
 0x296   :  { %v1627_v41 = vpop.eup %1626  ;;  %1646 = vrcp.f32 %v1166_v39  ;;  %v1134_v43 = vadd.f32 1.0, %v1625_v40  ;;  %v1080_v39 = vmul.f32 1.442695, %v985_v11  ;;  %v1082_v40 = vmul.f32 1.442695, %v986_v15 }
 0x297   :  { %v1629_v52 = vpop.eup %1628  ;;  %1648 = vrcp.f32 %v1118_v37  ;;  %v1119_v21 = vadd.f32 1.0, %v1627_v41 }
 0x298   :  { %v1631_v46 = vpop.eup %1630  ;;  %1650 = vrcp.f32 %v1134_v43  ;;  %v1120_v57 = vadd.f32 1.0, %v1629_v52 }
 0x299   :  { %v1633_v54 = vpop.eup %1632  ;;  %1652 = vrcp.f32 %v1119_v21  ;;  %v1125_v22 = vadd.f32 1.0, %v1631_v46  ;;  %v873_v46 = vadd.f32 %v2192_v48, %v2148_v25 }
 0x29a   :  { %v1635_v26 = vpop.eup %1634  ;;  %1654 = vrcp.f32 %v1120_v57  ;;  %v1141_v24 = vadd.f32 1.0, %v1633_v54 }
 0x29b   :  { %v1637_v4 = vpop.eup %1636  ;;  %1656 = vrcp.f32 %v1125_v22  ;;  %v1126_v5 = vadd.f32 1.0, %v1635_v26  ;;  %v992_v56 = vsub.f32 0.0, %v873_v46 }
 0x29c   :  { %v1639_v8 = vpop.eup %1638  ;;  %1269 = vst [vmem:[#allocation2 + $0x158] sm:$0xff] %v1637_v4  ;;  %1658 = vrcp.f32 %v1141_v24  ;;  %v879_v24 = vadd.f32 %v2198_v9, %v2162_v63 }
 0x29d   :  { %v1641_v13 = vpop.eup %1640  ;;  %1271 = vst [vmem:[#allocation2 + $0x168] sm:$0xff] %v1639_v8  ;;  %1660 = vrcp.f32 %v1126_v5  ;;  %v999_v8 = vsub.f32 0.0, %v877_v61  ;;  %v1094_v63 = vmul.f32 1.442695, %v992_v56 }
 0x29e   :  { %v1643_v16 = vpop.eup %1642  ;;  %1275 = vst [vmem:[#allocation2 + $0x188] sm:$0xff] %v1641_v13  ;;  %1662 = vpow2.f32 %v1028_v36  ;;  %v1000_v6 = vsub.f32 0.0, %v879_v24 }
 0x29f   :  { %v1645_v2 = vpop.eup %1644  ;;  %1277 = vst [vmem:[#allocation2 + $0x198] sm:$0xff] %v1643_v16  ;;  %1664 = vpow2.f32 %v1038_v53  ;;  %v1108_v0 = vmul.f32 1.442695, %v999_v8 }
 0x2a0   :  { %v1647_v23 = vpop.eup %1646  ;;  %1276 = vst [vmem:[#allocation2 + $0x190] sm:$0xff] %v1645_v2  ;;  %1666 = vpow2.f32 %v1098_v10 }
 0x2a1   :  { %v1649_v29 = vpop.eup %1648  ;;  %1278 = vst [vmem:[#allocation2 + $0x1a0] sm:$0xff] %v1647_v23  ;;  %1668 = vpow2.f32 %v1040_v14  ;;  %v1096_v14 = vmul.f32 1.442695, %v993_v3 }
 0x2a2   :  { %v1651_v30 = vpop.eup %1650  ;;  %1230 = vst [vmem:[#allocation2 + $0x20] sm:$0xff] %v1649_v29  ;;  %1670 = vpow2.f32 %v1070_v59  ;;  %v1110_v59 = vmul.f32 1.442695, %v1000_v6 }
 0x2a3   :  { %v1653_v12 = vpop.eup %1652  ;;  %1246 = vst.msk [vmem:[#allocation2 + $0xa0] sm:$0xff] %vm183_vm0, %v1651_v30  ;;  %1672 = vpow2.f32 %v1052_v28 }
 0x2a4   :  { %v1655_v35 = vpop.eup %1654  ;;  %1231 = vst [vmem:[#allocation2 + $0x28] sm:$0xff] %v1653_v12  ;;  %1674 = vpow2.f32 %v1112_v49 }
 0x2a5   :  { %v1657_v38 = vpop.eup %1656  ;;  %1232 = vst.msk [vmem:[#allocation2 + $0x30] sm:$0xff] %vm183_vm0, %v1655_v35  ;;  %1676 = vpow2.f32 %v1054_v33 }
 0x2a6   :  { %v1659_v42 = vpop.eup %1658  ;;  %1237 = vst [vmem:[#allocation2 + $0x58] sm:$0xff] %v1657_v38  ;;  %1678 = vpow2.f32 %v1084_v32 }
 0x2a7   :  { %v1661_v37 = vpop.eup %1660  ;;  %1253 = vst.msk [vmem:[#allocation2 + $0xd8] sm:$0xff] %vm183_vm0, %v1659_v42  ;;  %1680 = vpow2.f32 %v1066_v34 }
 0x2a8   :  { %v1663_v18 = vpop.eup %1662  ;;  %1238 = vst [vmem:[#allocation2 + $0x60] sm:$0xff] %v1661_v37  ;;  %1682 = vpow2.f32 %v1068_v27 }
 0x2a9   :  { %v1665_v41 = vpop.eup %1664  ;;  %v1127_v43 = vadd.f32 1.0, %v1663_v18  ;;  %1684 = vpow2.f32 %v1080_v39 }
 0x2aa   :  { %v1667_v36 = vpop.eup %1666  ;;  %v1132_v50 = vadd.f32 1.0, %v1665_v41  ;;  %1686 = vpow2.f32 %v1082_v40 }
 0x2ab   :  { %v1669_v52 = vpop.eup %1668  ;;  %1688 = vrcp.f32 %v1127_v43  ;;  %v1162_v21 = vadd.f32 1.0, %v1667_v36 }
 0x2ac   :  { %v1671_v53 = vpop.eup %1670  ;;  %1690 = vrcp.f32 %v1132_v50  ;;  %v1133_v51 = vadd.f32 1.0, %v1669_v52 }
 0x2ad   :  { %v1673_v57 = vpop.eup %1672  ;;  %1692 = vrcp.f32 %v1162_v21  ;;  %v1148_v47 = vadd.f32 1.0, %v1671_v53 }
 0x2ae   :  { %v1675_v54 = vpop.eup %1674  ;;  %1694 = vrcp.f32 %v1133_v51  ;;  %v1139_v22 = vadd.f32 1.0, %v1673_v57 }
 0x2af   :  { %v1677_v55 = vpop.eup %1676  ;;  %1696 = vrcp.f32 %v1148_v47  ;;  %v1169_v26 = vadd.f32 1.0, %v1675_v54 }
 0x2b0   :  { %v1679_v1 = vpop.eup %1678  ;;  %1698 = vrcp.f32 %v1139_v22  ;;  %v1140_v48 = vadd.f32 1.0, %v1677_v55 }
 0x2b1   :  { %v1681_v4 = vpop.eup %1680  ;;  %1700 = vrcp.f32 %v1169_v26  ;;  %v1155_v5 = vadd.f32 1.0, %v1679_v1 }
 0x2b2   :  { %v1683_v7 = vpop.eup %1682  ;;  %1702 = vrcp.f32 %v1140_v48  ;;  %v1146_v31 = vadd.f32 1.0, %v1681_v4 }
 0x2b3   :  { %v1685_v10 = vpop.eup %1684  ;;  %1704 = vrcp.f32 %v1155_v5  ;;  %v1147_v25 = vadd.f32 1.0, %v1683_v7 }
 0x2b4   :  { %v1687_v45 = vpop.eup %1686  ;;  %1706 = vrcp.f32 %v1146_v31  ;;  %v1153_v60 = vadd.f32 1.0, %v1685_v10 }
 0x2b5   :  { %v1689_v9 = vpop.eup %1688  ;;  %1708 = vrcp.f32 %v1147_v25  ;;  %v1154_v13 = vadd.f32 1.0, %v1687_v45 }
 0x2b6   :  { %v1691_v58 = vpop.eup %1690  ;;  %1239 = vst.msk [vmem:[#allocation2 + $0x68] sm:$0xff] %vm183_vm0, %v1689_v9  ;;  %1710 = vrcp.f32 %v1153_v60 }
 0x2b7   :  { %v1693_v16 = vpop.eup %1692  ;;  %1244 = vst [vmem:[#allocation2 + $0x90] sm:$0xff] %v1691_v58  ;;  %1712 = vrcp.f32 %v1154_v13 }
 0x2b8   :  { %v1695_v17 = vpop.eup %1694  ;;  %1274 = vst.msk [vmem:[#allocation2 + $0x180] sm:$0xff] %vm183_vm0, %v1693_v16  ;;  %1714 = vpow2.f32 %v1094_v63 }
 0x2b9   :  { %v1697_v19 = vpop.eup %1696  ;;  %1245 = vst [vmem:[#allocation2 + $0x98] sm:$0xff] %v1695_v17  ;;  %1716 = vpow2.f32 %v1096_v14 }
 0x2ba   :  { %v1699_v2 = vpop.eup %1698  ;;  %1260 = vst.msk [vmem:[#allocation2 + $0x110] sm:$0xff] %vm183_vm0, %v1697_v19  ;;  %1718 = vpow2.f32 %v1108_v0 }
 0x2bb   :  { %v1701_v28 = vpop.eup %1700  ;;  %1251 = vst [vmem:[#allocation2 + $0xc8] sm:$0xff] %v1699_v2  ;;  %1720 = vpow2.f32 %v1110_v59 }
 0x2bc   :  { %v1703_v20 = vpop.eup %1702  ;;  %1281 = vst.msk [vmem:[#allocation2 + $0x1b8] sm:$0xff] %vm183_vm0, %v1701_v28 }
 0x2bd   :  { %v1705_v23 = vpop.eup %1704  ;;  %1252 = vst [vmem:[#allocation2 + $0xd0] sm:$0xff] %v1703_v20 }
 0x2be   :  { %v1707_v49 = vpop.eup %1706  ;;  %1267 = vst.msk [vmem:[#allocation2 + $0x148] sm:$0xff] %vm183_vm0, %v1705_v23 }
 0x2bf   :  { %v1709_v62 = vpop.eup %1708  ;;  %1258 = vst [vmem:[#allocation2 + $0x100] sm:$0xff] %v1707_v49 }
 0x2c0   :  { %v1711_v29 = vpop.eup %1710  ;;  %1259 = vst [vmem:[#allocation2 + $0x108] sm:$0xff] %v1709_v62 }
 0x2c1   :  { %v1713_v33 = vpop.eup %1712  ;;  %1265 = vst [vmem:[#allocation2 + $0x138] sm:$0xff] %v1711_v29 }
 0x2c2   :  { %v1715_v11 = vpop.eup %1714  ;;  %1266 = vst [vmem:[#allocation2 + $0x140] sm:$0xff] %v1713_v33 }
 0x2c3   :  { %v1717_v30 = vpop.eup %1716  ;;  %v1160_v32 = vadd.f32 1.0, %v1715_v11 }
 0x2c4   :  { %v1719_v15 = vpop.eup %1718  ;;  %v1161_v12 = vadd.f32 1.0, %v1717_v30 }
 0x2c5   :  { %v1721_v34 = vpop.eup %1720  ;;  %1722 = vrcp.f32 %v1160_v32  ;;  %v1167_v35 = vadd.f32 1.0, %v1719_v15 }
 0x2c6   :  { %1724 = vrcp.f32 %v1161_v12  ;;  %v1168_v27 = vadd.f32 1.0, %v1721_v34 }
 0x2c7   :  { %1726 = vrcp.f32 %v1167_v35 }
 0x2c8   :  { %1728 = vrcp.f32 %v1168_v27 }
 0x2cf   :  { %v1723_v38 = vpop.eup %1722 }
 0x2d0   :  { %v1725_v39 = vpop.eup %1724  ;;  %1272 = vst [vmem:[#allocation2 + $0x170] sm:$0xff] %v1723_v38 }
 0x2d1   :  { %v1727_v42 = vpop.eup %1726  ;;  %1273 = vst [vmem:[#allocation2 + $0x178] sm:$0xff] %v1725_v39 }
 0x2d2   :  { %v1729_v40 = vpop.eup %1728  ;;  %1279 = vst [vmem:[#allocation2 + $0x1a8] sm:$0xff] %v1727_v42 }
 0x2d3   :  { %1280 = vst [vmem:[#allocation2 + $0x1b0] sm:$0xff] %v1729_v40 }
 0x2d4   :  { %1741 = shalt.err (!%p1738_p4)
}
 0x2d5   :  { %s1742_s30 = scalar_lea.hbm %s2261_s7, 7168 }
 0x2d6   :  { %p1743_p5 = scmp.ne.s32.totalorder %s2261_s7, %s1742_s30  ;;  %p1746_p6 = scmp.lt.u32.totalorder %s1742_s30, %s2261_s7 }
 0x2d8   :  { %p1748_p7 = pnand %p1746_p6, %p1743_p5 }
 0x2da   :  { %1751 = shalt.err (!%p1748_p7)
}
 0x2db   :  { %s1757_s12 = smov 896   ;;  %s1758_s13 = smov 56  }
 0x2dc   :  { %1293 = dma.vmem_to_hbm [thread:$0]  %s1288_s26, 7168, %s2261_s7, [#allocation3], %s1757_s12, %s1757_s12, %s1758_s13  }
 0x2dd   :  { %1752 = dma.done.wait [#allocation3], 7168  }
 0x2de   :  { %1753 = vsyncadd [#allocation3], 4294960128 }
 0x2df   :  { %1297 = vsyncpa [#allocation3], 1 }

</bundles_post_ra>
